<compile_context>
chip_gen: v6e
topology: v6e:2x2x1
jax: 0.10.0
libtpu: 0.0.40
codegen_flags: <defaults>
</compile_context>

<pallas_src>
import jax
import jax.numpy as jnp
from jax.experimental import pallas as pl
from jax.experimental.pallas import tpu as pltpu

LANES = 128
MAX_ROW_TILE = 4096  # (4096,128) f32 = 2 MiB per buffer

# Minimum sublane alignment for a block's second-to-last dim, by element size
# (f32 -> 8, bf16/f16 -> 16, int8/fp8 -> 32).
_MIN_SUBLANE = {4: 8, 2: 16, 1: 32}


def _dra_kernel(params_ref, x_ref, o_ref):
    # params_ref lives in SMEM: [a, b, c, d] as float32 scalars.
    a = params_ref[0]
    b = params_ref[1]
    c = params_ref[2]
    d = params_ref[3]
    a_over_b = a / b  # scalar divide, hoisted off the vector path

    # Upcast in-kernel (keeps HBM traffic at the input's native width);
    # all math in f32, downcast only at the store.
    x = x_ref[...].astype(jnp.float32)
    bx = b * x
    s = jnp.sin(a * x)
    y = x + a_over_b * (s * s) + c * jnp.cos(bx) + d * jnp.tanh(bx)
    o_ref[...] = y.astype(o_ref.dtype)


def dra_forward(x, a, b, c, d):
    """DRA.forward for x of any shape (e.g. NCHW); a,b,c,d: shape-(1,) params."""
    orig_shape = x.shape
    dtype = x.dtype
    itemsize = jnp.dtype(dtype).itemsize
    min_sub = _MIN_SUBLANE.get(itemsize, 8)

    flat = x.reshape(-1)
    n = flat.shape[0]

    # Lane-dense slab.  Zero pad / zero output slice whenever n % 128 == 0
    # (the common case); only truly unaligned sizes pay the minimal-pad path.
    pad = (-n) % LANES
    if pad:
        flat = jnp.pad(flat, (0, pad))
    rows = (n + pad) // LANES
    slab = flat.reshape(rows, LANES)

    # Tile choice: as large as possible (amortize ~0.35us per grid step) but
    # prefer >= 2 grid steps for non-trivial inputs so the "parallel" axis can
    # be split across both TensorCores on v7x.
    if rows > 2 * min_sub:
        half = pl.cdiv(rows, 2)
        half_aligned = pl.cdiv(half, min_sub) * min_sub
        row_tile = min(MAX_ROW_TILE, half_aligned)
    else:
        row_tile = rows  # single full-array block (any row count allowed)
    grid = (pl.cdiv(rows, row_tile),)

    params = jnp.concatenate(
        [jnp.ravel(a), jnp.ravel(b), jnp.ravel(c), jnp.ravel(d)]
    ).astype(jnp.float32)  # (4,) — tiny, lives in SMEM

    out = pl.pallas_call(
        _dra_kernel,
        out_shape=jax.ShapeDtypeStruct((rows, LANES), dtype),
        grid_spec=pltpu.PrefetchScalarGridSpec(
            num_scalar_prefetch=0,
            grid=grid,
            in_specs=[
                pl.BlockSpec(memory_space=pltpu.MemorySpace.SMEM),  # params
                pl.BlockSpec((row_tile, LANES), lambda i: (i, 0)),  # x tile
            ],
            out_specs=pl.BlockSpec((row_tile, LANES), lambda i: (i, 0)),
        ),
        compiler_params=pltpu.CompilerParams(
            dimension_semantics=("parallel",),
        ),
    )(params, slab)

    out_flat = out.reshape(-1)
    if pad:
        out_flat = out_flat[:n]
    return out_flat.reshape(orig_shape)


if __name__ == "__main__":
    key = jax.random.PRNGKey(0)
    kx, ka, kb, kc, kd = jax.random.split(key, 5)

    # Small NCHW input, matching the elementwise semantics of DRA.forward.
    x = jax.random.normal(kx, (2, 4, 16, 16), dtype=jnp.float32)

    # Deterministic "randn(1)" parameters (synthetic init, no checkpoint).
    a = jax.random.normal(ka, (1,), dtype=jnp.float32)
    b = jax.random.normal(kb, (1,), dtype=jnp.float32)
    c = jax.random.normal(kc, (1,), dtype=jnp.float32)
    d = jax.random.normal(kd, (1,), dtype=jnp.float32)

    out = dra_forward(x, a, b, c, d)
    out = jax.block_until_ready(out)

    # Pure-JAX reference of the same math.
    ref = (
        x
        + a[0] * jnp.square(jnp.sin(a[0] * x)) / b[0]
        + c[0] * jnp.cos(b[0] * x)
        + d[0] * jnp.tanh(b[0] * x)
    )
    assert out.shape == x.shape
    assert out.dtype == x.dtype
    assert jnp.allclose(out, ref, atol=1e-5, rtol=1e-5)

    print("KERNEL_OK")
</pallas_src>

<mosaic_0001>
module attributes {stable_mosaic.version = 11 : i64} {
  func.func @_dra_kernel(%arg0: i32, %arg1: memref<4xf32, #tpu.memory_space<smem>>, %arg2: memref<16x128xf32, #tpu.memory_space<vmem>>, %arg3: memref<16x128xf32, #tpu.memory_space<vmem>>) attributes {dimension_semantics = [#tpu.dimension_semantics<parallel>], iteration_bounds = array<i64: 1>, scalar_prefetch = 0 : i64, scratch_operands = 0 : i64, tpu.core_type = #tpu.core_type<tc>, window_params = [{transform_indices = @transform_0, window_bounds = array<i64: 4>}, {transform_indices = @transform_1, window_bounds = array<i64: 16, 128>}, {transform_indices = @transform_2, window_bounds = array<i64: 16, 128>}]} {
    %c0 = arith.constant 0 : index
    %0 = memref.load %arg1[%c0] : memref<4xf32, #tpu.memory_space<smem>>
    %c1 = arith.constant 1 : index
    %1 = memref.load %arg1[%c1] : memref<4xf32, #tpu.memory_space<smem>>
    %c2 = arith.constant 2 : index
    %2 = memref.load %arg1[%c2] : memref<4xf32, #tpu.memory_space<smem>>
    %c3 = arith.constant 3 : index
    %3 = memref.load %arg1[%c3] : memref<4xf32, #tpu.memory_space<smem>>
    %4 = arith.divf %0, %1 : f32
    %c0_0 = arith.constant 0 : index
    %c0_1 = arith.constant 0 : index
    %5 = vector.load %arg2[%c0_0, %c0_1] : memref<16x128xf32, #tpu.memory_space<vmem>>, vector<16x128xf32>
    %6 = vector.broadcast %1 : f32 to vector<16x128xf32>
    %7 = arith.mulf %6, %5 : vector<16x128xf32>
    %8 = vector.broadcast %0 : f32 to vector<16x128xf32>
    %9 = arith.mulf %8, %5 : vector<16x128xf32>
    %10 = math.sin %9 : vector<16x128xf32>
    %11 = arith.mulf %10, %10 : vector<16x128xf32>
    %12 = vector.broadcast %4 : f32 to vector<16x128xf32>
    %13 = arith.mulf %12, %11 : vector<16x128xf32>
    %14 = arith.addf %5, %13 : vector<16x128xf32>
    %15 = math.cos %7 : vector<16x128xf32>
    %16 = vector.broadcast %2 : f32 to vector<16x128xf32>
    %17 = arith.mulf %16, %15 : vector<16x128xf32>
    %18 = arith.addf %14, %17 : vector<16x128xf32>
    %19 = math.tanh %7 : vector<16x128xf32>
    %20 = vector.broadcast %3 : f32 to vector<16x128xf32>
    %21 = arith.mulf %20, %19 : vector<16x128xf32>
    %22 = arith.addf %18, %21 : vector<16x128xf32>
    %c0_2 = arith.constant 0 : index
    %c0_3 = arith.constant 0 : index
    %23 = vector.load %arg3[%c0_2, %c0_3] : memref<16x128xf32, #tpu.memory_space<vmem>>, vector<16x128xf32>
    tpu.vector_store %arg3[%c0_2, %c0_3], %22 {strides = array<i32>} : memref<16x128xf32, #tpu.memory_space<vmem>>, vector<16x128xf32>,
    return
  }
  func.func @transform_0(%arg0: i32) -> i32 {
    %c0_i32 = arith.constant 0 : i32
    %c0_i32_0 = arith.constant 0 : i32
    return %c0_i32 : i32
  }
  func.func @transform_1(%arg0: i32) -> (i32, i32) {
    %c0_i32 = arith.constant 0 : i32
    %c0_i32_0 = arith.constant 0 : i32
    return %arg0, %c0_i32 : i32, i32
  }
  func.func @transform_2(%arg0: i32) -> (i32, i32) {
    %c0_i32 = arith.constant 0 : i32
    %c0_i32_0 = arith.constant 0 : i32
    return %arg0, %c0_i32 : i32, i32
  }
}

</mosaic_0001>

<bundles_post_ra>
// kernel: tpu_custom_call.1
= control target key start
LH: loop header
LB: loop body
LE: loop exit
PB: predicated region body
PF: predicated region fallthrough
CT: control target
= control target key end

     0   :  { %7 = vsyncpa [#allocation5], 0  ;;  %s974_s0 = inlined_call_operand.hbm [shape: f32[4], index: 0, kind: input, shape index: {}]   ;;  %s975_s1 = inlined_call_operand.hbm [shape: f32[16,128], index: 1, kind: input, shape index: {}]   ;;  %s976_s2 = inlined_call_operand.hbm [shape: f32[16,128], index: 2, kind: output, shape index: {}]  }
   0x1   :  { %8 = vsyncpa [#allocation3], 0 }
   0x2   :  { %9 = vsyncpa [#allocation4], 0  ;;  %s630_s9 = smov [#allocation2]   ;;  %s631_s12 = smov [#allocation6]  }
   0x3   :  { %17 = dma.hbm_to_smem %s974_s0, 16, %s630_s9, [#allocation5]  }
   0x4   :  { %s23_s13 = sshll.u32 %s631_s12, 4  ;;  %s24_s13 = int_to_ptr.vmem [resolvable:$true] %s23_s13 }
   0x5   :  { %s592_s14 = scalar_lea.vmem %s24_s13, 256  ;;  %p597_p1 = scmp.lt.s32.totalorder %s24_s13, %s24_s13 }
   0x6   :  { %p593_p0 = scmp.ne.s32.totalorder %s24_s13, %s592_s14  ;;  %p598_p2 = scmp.lt.s32.totalorder %s592_s14, %s592_s14 }
   0x8   :  { %p599_p3 = por %p598_p2, %p597_p1 }
   0xa   :  { %p600_p4 = pnand %p599_p3, %p593_p0 }
   0xc   :  { %603 = shalt.err (!%p600_p4)
}
   0xd   :  { %s632_s15 = smov 128   ;;  %s633_s16 = smov 8  }
   0xe   :  { %29 = dma.hbm_to_vmem [thread:$0]  %s975_s1, 256, %s24_s13, [#allocation3], %s632_s15, %s632_s15, %s633_s16  }
   0xf   :  { %624 = dma.done.wait [#allocation5], 16  }
  0x10   :  { %625 = vsyncadd [#allocation5], 4294967280 }
  0x11   :  { %626 = dma.done.wait [#allocation3], 256  }
  0x12   :  { %627 = vsyncadd [#allocation3], 4294967040 }
  0x13   :  { %36 = sfence }
  0x14   :  { %s665_s0 = sld [smem:[#allocation2]]  ;;  %v667_v0 = vld [vmem:[#allocation6] sm:$0xff]  ;;  %v669_v1 = vld [vmem:[#allocation6 + $0x8] sm:$0xff]  ;;  %v634_v35 = vmov 683565275   ;;  %s640_s23 = smov [#allocation7]  }
  0x15   :  { %s506_s19 = sld [smem:[#allocation2 + $0x1]]  ;;  %v635_v37 = vmov 2475754826   ;;  %v636_v39 = vmov 2131351028   ;;  %s493_s24 = sshll.u32 %s640_s23, 4  ;;  %s494_s24 = int_to_ptr.vmem [resolvable:$true] %s493_s24 }
  0x16   :  { %v637_v41 = vmov 2102212464   ;;  %v638_v43 = vmov 920167782   ;;  %v639_v51 = vmov 1326507024   ;;  %p609_p6 = scmp.lt.s32.totalorder %s494_s24, %s494_s24 }
  0x17   :  { %s936_s21 = sld [smem:[#allocation2 + $0x2]]  ;;  %s604_s25 = scalar_lea.vmem %s494_s24, 256 }
  0x18   :  { %s938_s22 = sld [smem:[#allocation2 + $0x3]]  ;;  %p605_p5 = scmp.ne.s32.totalorder %s494_s24, %s604_s25 }
  0x19   :  { %p610_p7 = scmp.lt.s32.totalorder %s604_s25, %s604_s25 }
  0x1a   :  { %v50_v2 = vstv %s665_s0 }
  0x1b   :  { %v672_v3 = vstv %s506_s19  ;;  %v675_v4 = vmul.f32 %v50_v2, %v667_v0  ;;  %v678_v5 = vmul.f32 %v50_v2, %v669_v1  ;;  %p611_p8 = por %p610_p7, %p609_p6 }
  0x1c   :  { %554 = vrcp.f32 %v672_v3  ;;  %v683_v6 = vmul.f32 %v667_v0, %v672_v3 }
  0x1d   :  { %v53_v7 = vand.u32 2147483647, %v675_v4  ;;  %v56_v8 = vand.u32 2139095040, %v675_v4  ;;  %v157_v9 = vand.u32 2147483647, %v678_v5  ;;  %v160_v10 = vand.u32 2139095040, %v678_v5  ;;  %p612_p9 = pnand %p611_p8, %p605_p5 }
  0x1e   :  { %v271_v15 = vand.u32 2139095040, %v683_v6  ;;  %v268_v28 = vand.u32 2147483647, %v683_v6 }
  0x1f   :  { %v57_v11 = vshrl.u32 %v56_v8, 23  ;;  %v60_v12 = vand.u32 8388607, %v53_v7  ;;  %v161_v13 = vshrl.u32 %v160_v10, 23  ;;  %v164_v14 = vand.u32 8388607, %v157_v9 }
  0x20   :  { %v272_v18 = vshrl.u32 %v271_v15, 23 }
  0x21   :  { %v509_v16 = vadd.s32 4294967169, %v57_v11  ;;  %v513_v17 = vadd.s32 4294967169, %v161_v13  ;;  %v61_v20 = vor.u32 8388608, %v60_v12  ;;  %v165_v21 = vor.u32 8388608, %v164_v14 }
  0x22   :  { %v517_v23 = vadd.s32 4294967169, %v272_v18 }
  0x23   :  { %v63_v19 = vadd.s32 1, %v509_v16  ;;  %v167_v22 = vadd.s32 1, %v513_v17  ;;  %v695_v29 = vshll.u32 %v61_v20, 8  ;;  %v697_v31 = vshll.u32 %v165_v21, 8 }
  0x24   :  { %v699_v32 = vadd.s32 1, %v517_v23 }
  0x25   :  { %vm64_vm0 = vcmp.gt.s32.totalorder %v63_v19, 0  ;;  %vm168_vm1 = vcmp.gt.s32.totalorder %v167_v22, 0 }
  0x26   :  { %v65_v24 = vsel %vm64_vm0, %v63_v19, 0  ;;  %v169_v27 = vsel %vm168_vm1, %v167_v22, 0  ;;  %vm279_vm6 = vcmp.gt.s32.totalorder %v699_v32, 0 }
  0x27   :  { %v66_v25 = vshrl.u32 %v65_v24, 5  ;;  %v67_v26 = vand.u32 31, %v65_v24  ;;  %v171_v30 = vand.u32 31, %v169_v27  ;;  %v706_v45 = vshrl.u32 %v169_v27, 5 }
  0x29   :  { %v555_v33 = vpop.eup %554  ;;  %v68_v34 = vsub.s32 32, %v67_v26  ;;  %v70_v36 = vshll.u32 %v634_v35, %v67_v26  ;;  %v73_v38 = vshll.u32 %v635_v37, %v67_v26  ;;  %v76_v40 = vshll.u32 %v636_v39, %v67_v26 }
  0x2a   :  { %525 = vpush %v555_v33  ;;  %v79_v42 = vshll.u32 %v637_v41, %v67_v26  ;;  %v82_v44 = vshll.u32 %v638_v43, %v67_v26  ;;  %vm85_vm2 = vcmp.lt.s32.totalorder %v66_v25, 1  ;;  %vm86_vm3 = vcmp.lt.s32.totalorder %v66_v25, 2 }
  0x2b   :  { %v69_v46 = vshrl.u32 %v634_v35, %v68_v34  ;;  %v71_v47 = vshrl.u32 %v635_v37, %v68_v34  ;;  %v74_v48 = vshrl.u32 %v636_v39, %v68_v34  ;;  %v77_v49 = vshrl.u32 %v637_v41, %v68_v34 }
  0x2c   :  { %v80_v50 = vshrl.u32 %v638_v43, %v68_v34  ;;  %v83_v52 = vshrl.u32 %v639_v51, %v68_v34  ;;  %vm88_vm4 = vcmp.lt.s32.totalorder %v66_v25, 4  ;;  %v172_v56 = vsub.s32 32, %v171_v30 }
  0x2d   :  { %v72_v53 = vor.u32 %v71_v47, %v70_v36  ;;  %v75_v54 = vor.u32 %v74_v48, %v73_v38  ;;  %v78_v55 = vor.u32 %v77_v49, %v76_v40  ;;  %vm87_vm5 = vcmp.lt.s32.totalorder %v66_v25, 3 }
  0x2e   :  { %v81_v57 = vor.u32 %v80_v50, %v79_v42  ;;  %v84_v58 = vor.u32 %v83_v52, %v82_v44  ;;  %v174_v59 = vshll.u32 %v634_v35, %v171_v30  ;;  %v177_v11 = vshll.u32 %v635_v37, %v171_v30 }
  0x2f   :  { %v89_v60 = vsel %vm85_vm2, %v69_v46, %v72_v53  ;;  %v90_v61 = vsel %vm88_vm4, %v78_v55, 2102212464  ;;  %v93_v62 = vsel %vm85_vm2, %v72_v53, %v75_v54  ;;  %v97_v63 = vsel %vm85_vm2, %v75_v54, %v78_v55 }
  0x30   :  { %v91_v2 = vsel %vm87_vm5, %v75_v54, %v90_v61  ;;  %v94_v8 = vsel %vm88_vm4, %v81_v57, 920167782  ;;  %v98_v10 = vsel %vm88_vm4, %v84_v58, 1326507024  ;;  %v173_v14 = vshrl.u32 %v634_v35, %v172_v56 }
  0x31   :  { %v95_v12 = vsel %vm87_vm5, %v78_v55, %v94_v8  ;;  %v99_v13 = vsel %vm87_vm5, %v81_v57, %v98_v10  ;;  %v175_v15 = vshrl.u32 %v635_v37, %v172_v56  ;;  %v92_v16 = vsel %vm86_vm3, %v89_v60, %v91_v2 }
  0x32   :  { %v96_v17 = vsel %vm86_vm3, %v93_v62, %v95_v12  ;;  %v100_v18 = vsel %vm86_vm3, %v97_v63, %v99_v13  ;;  %v178_v19 = vshrl.u32 %v636_v39, %v172_v56  ;;  %v180_v27 = vshll.u32 %v636_v39, %v171_v30 }
  0x33   :  { %v727_v20 = vmul.u32.u64.low %v695_v29, %v100_v18  ;;  %v728_v21 = vmul.u32.u64.high %v695_v29, %v100_v18, %v727_v20  ;;  %v731_v22 = vmul.u32.u64.low %v695_v29, %v96_v17  ;;  %v732_v23 = vmul.u32.u64.high %v695_v29, %v96_v17, %v731_v22 }
  0x34   :  { %v176_v24 = vor.u32 %v175_v15, %v174_v59  ;;  %v179_v26 = vor.u32 %v178_v19, %v177_v11  ;;  %v181_v33 = vshrl.u32 %v637_v41, %v172_v56  ;;  %v183_v25 = vshll.u32 %v637_v41, %v171_v30 }
  0x35   :  { %v184_v34 = vshrl.u32 %v638_v43, %v172_v56  ;;  %v186_v36 = vshll.u32 %v638_v43, %v171_v30  ;;  %v187_v38 = vshrl.u32 %v639_v51, %v172_v56  ;;  %v108_v40 = vmul.u32 %v695_v29, %v92_v16 }
  0x36   :  { %v182_v42 = vor.u32 %v181_v33, %v180_v27  ;;  %vm189_vm7 = vcmp.lt.s32.totalorder %v706_v45, 1  ;;  %vm190_vm8 = vcmp.lt.s32.totalorder %v706_v45, 2  ;;  %vm110_vm9 = vc.u32 %v728_v21, %v731_v22 }
  0x37   :  { %v111_v44 = vadd.s32 1, %v732_v23  ;;  %v185_v46 = vor.u32 %v184_v34, %v183_v25  ;;  %vm191_vm10 = vcmp.lt.s32.totalorder %v706_v45, 3  ;;  %v188_v47 = vor.u32 %v187_v38, %v186_v36 }
  0x38   :  { %vm192_vm11 = vcmp.lt.s32.totalorder %v706_v45, 4  ;;  %v193_v30 = vsel %vm189_vm7, %v173_v14, %v176_v24  ;;  %v197_v48 = vsel %vm189_vm7, %v176_v24, %v179_v26  ;;  %v201_v52 = vsel %vm189_vm7, %v179_v26, %v182_v42 }
  0x39   :  { %v112_v29 = vsel %vm110_vm9, %v111_v44, %v732_v23  ;;  %v194_v49 = vsel %vm192_vm11, %v182_v42, 2102212464  ;;  %v198_v50 = vsel %vm192_vm11, %v185_v46, 920167782  ;;  %v202_v56 = vsel %vm192_vm11, %v188_v47, 1326507024 }
  0x3a   :  { %v113_v53 = vadd.s32 %v112_v29, %v108_v40  ;;  %v195_v54 = vsel %vm191_vm10, %v179_v26, %v194_v49  ;;  %v199_v55 = vsel %vm191_vm10, %v182_v42, %v198_v50  ;;  %v203_v59 = vsel %vm191_vm10, %v185_v46, %v202_v56 }
  0x3b   :  { %v196_v57 = vsel %vm190_vm8, %v193_v30, %v195_v54  ;;  %v200_v58 = vsel %vm190_vm8, %v197_v48, %v199_v55  ;;  %v280_v60 = vsel %vm279_vm6, %v699_v32, 0  ;;  %v204_v62 = vsel %vm190_vm8, %v201_v52, %v203_v59 }
  0x3c   :  { %v114_v61 = vadd.s32 536870912, %v113_v53  ;;  %v760_v63 = vmul.u32.u64.low %v697_v31, %v200_v58  ;;  %v761_v2 = vmul.u32.u64.high %v697_v31, %v200_v58, %v760_v63  ;;  %v275_v11 = vand.u32 8388607, %v268_v28 }
  0x3d   :  { %v765_v8 = vmul.u32.u64.low %v697_v31, %v204_v62  ;;  %v766_v10 = vmul.u32.u64.high %v697_v31, %v204_v62, %v765_v8  ;;  %v772_v12 = vmul.f32 %v669_v1, %v672_v3  ;;  %v282_v45 = vand.u32 31, %v280_v60 }
  0x3e   :  { %v774_v32 = vshrl.u32 %v114_v61, 30  ;;  %v212_v13 = vmul.u32 %v697_v31, %v196_v57  ;;  %v215_v15 = vadd.s32 1, %v761_v2  ;;  %v276_v17 = vor.u32 8388608, %v275_v11 }
  0x3f   :  { %v283_v16 = vsub.s32 32, %v282_v45  ;;  %vm214_vm12 = vc.u32 %v766_v10, %v760_v63  ;;  %v281_v20 = vshrl.u32 %v280_v60, 5  ;;  %v374_v3 = vand.u32 2139095040, %v772_v12 }
  0x40   :  { %v116_v14 = vshll.u32 %v774_v32, 30  ;;  %v216_v19 = vsel %vm214_vm12, %v215_v15, %v761_v2  ;;  %v285_v24 = vshll.u32 %v634_v35, %v282_v45  ;;  %v288_v26 = vshll.u32 %v635_v37, %v282_v45 }
  0x41   :  { %v217_v23 = vadd.s32 %v216_v19, %v212_v13  ;;  %v286_v31 = vshrl.u32 %v635_v37, %v283_v16  ;;  %v289_v33 = vshrl.u32 %v636_v39, %v283_v16  ;;  %v291_v25 = vshll.u32 %v636_v39, %v282_v45 }
  0x42   :  { %v117_v18 = vsub.s32 %v113_v53, %v116_v14  ;;  %v292_v34 = vshrl.u32 %v637_v41, %v283_v16  ;;  %v294_v38 = vshll.u32 %v637_v41, %v282_v45  ;;  %v790_v40 = vshll.u32 %v276_v17, 8 }
  0x43   :  { %v218_v36 = vadd.s32 536870912, %v217_v23  ;;  %v295_v44 = vshrl.u32 %v638_v43, %v283_v16  ;;  %vm303_vm13 = vcmp.lt.s32.totalorder %v281_v20, 4  ;;  %v375_v46 = vshrl.u32 %v374_v3, 23 }
  0x44   :  { %v119_v27 = vsub.s32 0, %v117_v18  ;;  %v284_v30 = vshrl.u32 %v634_v35, %v283_v16  ;;  %v297_v48 = vshll.u32 %v638_v43, %v282_v45  ;;  %v298_v29 = vshrl.u32 %v639_v51, %v283_v16 }
  0x45   :  { %v793_v47 = vshrl.u32 %v218_v36, 30  ;;  %v287_v50 = vor.u32 %v286_v31, %v285_v24  ;;  %v290_v52 = vor.u32 %v289_v33, %v288_v26  ;;  %v293_v53 = vor.u32 %v292_v34, %v291_v25 }
  0x46   :  { %v510_v42 = vmin.u32 %v119_v27, %v117_v18  ;;  %v296_v55 = vor.u32 %v295_v44, %v294_v38  ;;  %vm300_vm14 = vcmp.lt.s32.totalorder %v281_v20, 1  ;;  %vm302_vm15 = vcmp.lt.s32.totalorder %v281_v20, 3 }
  0x47   :  { %v220_v54 = vshll.u32 %v793_v47, 30  ;;  %v109_v56 = vadd.s32 %v731_v22, %v728_v21  ;;  %v299_v58 = vor.u32 %v298_v29, %v297_v48  ;;  %v305_v59 = vsel %vm303_vm13, %v293_v53, 2102212464 }
  0x48   :  { %v121_v49 = vclz %v510_v42  ;;  %vm301_vm0 = vcmp.lt.s32.totalorder %v281_v20, 2  ;;  %v309_v61 = vsel %vm303_vm13, %v296_v55, 920167782  ;;  %v521_v62 = vadd.s32 4294967169, %v375_v46 }
  0x49   :  { %v802_v60 = vsub.s32 %v217_v23, %v220_v54  ;;  %v304_v2 = vsel %vm300_vm14, %v284_v30, %v287_v50  ;;  %v308_v8 = vsel %vm300_vm14, %v287_v50, %v290_v52  ;;  %v310_v11 = vsel %vm302_vm15, %v293_v53, %v309_v61 }
  0x4a   :  { %v511_v57 = vadd.s32 4294967294, %v121_v49  ;;  %v306_v22 = vsel %vm302_vm15, %v290_v52, %v305_v59  ;;  %v312_v13 = vsel %vm300_vm14, %v290_v52, %v293_v53  ;;  %v313_v17 = vsel %vm303_vm13, %v299_v58, 1326507024 }
  0x4b   :  { %v223_v21 = vsub.s32 0, %v802_v60  ;;  %v311_v3 = vsel %vm301_vm0, %v308_v8, %v310_v11  ;;  %v314_v23 = vsel %vm302_vm15, %v296_v55, %v313_v17  ;;  %v381_v27 = vadd.s32 1, %v521_v62 }
  0x4c   :  { %vm512_vm1 = vcmp.lt.s32.totalorder %v511_v57, 0  ;;  %v315_v26 = vsel %vm301_vm0, %v312_v13, %v314_v23  ;;  %v307_v25 = vsel %vm301_vm0, %v304_v2, %v306_v22  ;;  %v371_v53 = vand.u32 2147483647, %v772_v12 }
  0x4d   :  { %v124_v45 = vsel %vm512_vm1, 0, %v511_v57  ;;  %v514_v19 = vmin.u32 %v223_v21, %v802_v60  ;;  %v822_v44 = vmul.u32.u64.low %v790_v40, %v311_v3  ;;  %v823_v46 = vmul.u32.u64.high %v790_v40, %v311_v3, %v822_v44 }
  0x4e   :  { %v125_v14 = vsub.s32 32, %v124_v45  ;;  %v126_v15 = vshll.u32 %v117_v18, %v124_v45  ;;  %v129_v16 = vsub.s32 4294967266, %v124_v45  ;;  %vm382_vm2 = vcmp.gt.s32.totalorder %v381_v27, 0 }
  0x4f   :  { %v225_v33 = vclz %v514_v19  ;;  %v818_v18 = vmul.u32.u64.low %v790_v40, %v315_v26  ;;  %v819_v38 = vmul.u32.u64.high %v790_v40, %v315_v26, %v818_v18  ;;  %v383_v48 = vsel %vm382_vm2, %v381_v27, 0 }
  0x50   :  { %v127_v24 = vshrl.u32 %v109_v56, %v125_v14  ;;  %v130_v31 = vadd.s32 127, %v129_v16  ;;  %v385_v29 = vand.u32 31, %v383_v48  ;;  %v323_v20 = vmul.u32 %v790_v40, %v307_v25 }
  0x51   :  { %v515_v42 = vadd.s32 4294967294, %v225_v33  ;;  %vm325_vm4 = vc.u32 %v819_v38, %v822_v44  ;;  %v326_v52 = vadd.s32 1, %v823_v46  ;;  %vm55_vm5 = vcmp.lt.s32.totalorder %v675_v4, 0 }
  0x52   :  { %v128_v34 = vor.u32 %v127_v24, %v126_v15  ;;  %v131_v36 = vshll.u32 %v130_v31, 23  ;;  %v386_v56 = vsub.s32 32, %v385_v29  ;;  %vm835_vm6 = vcmp.le.f32.partialorder %v53_v7, 0.7853982 }
  0x53   :  { %vm516_vm3 = vcmp.lt.s32.totalorder %v515_v42, 0  ;;  %v327_v55 = vsel %vm325_vm4, %v326_v52, %v823_v46  ;;  %v213_v59 = vadd.s32 %v760_v63, %v766_v10  ;;  %v378_v61 = vand.u32 8388607, %v371_v53 }
  0x54   :  { %v132_v30 = vor.u32 4788187, %v131_v36  ;;  %v135_v50 = vcvt.s32.f32 %v128_v34  ;;  %v228_v54 = vsel %vm516_vm3, 0, %v515_v42  ;;  %v328_v57 = vadd.s32 %v327_v55, %v323_v20 }
  0x55   :  { %v229_v62 = vsub.s32 32, %v228_v54  ;;  %v233_v2 = vsub.s32 4294967266, %v228_v54  ;;  %v388_v11 = vshll.u32 %v634_v35, %v385_v29  ;;  %v389_v45 = vshrl.u32 %v635_v37, %v386_v56 }
  0x56   :  { %v133_v49 = vand.u32 2147483647, %v132_v30  ;;  %v329_v8 = vadd.s32 536870912, %v328_v57  ;;  %v391_v21 = vshll.u32 %v635_v37, %v385_v29  ;;  %v392_v7 = vshrl.u32 %v636_v39, %v386_v56 }
  0x57   :  { %v397_v22 = vshll.u32 %v637_v41, %v385_v29  ;;  %v384_v14 = vshrl.u32 %v383_v48, 5  ;;  %v394_v63 = vshll.u32 %v636_v39, %v385_v29  ;;  %v395_v10 = vshrl.u32 %v637_v41, %v386_v56 }
  0x58   :  { %v136_v58 = vmul.f32 %v135_v50, %v133_v49  ;;  %v848_v13 = vshrl.u32 %v329_v8, 30  ;;  %v379_v16 = vor.u32 8388608, %v378_v61  ;;  %v398_v17 = vshrl.u32 %v638_v43, %v386_v56 }
  0x59   :  { %v400_v19 = vshll.u32 %v638_v43, %v385_v29  ;;  %v230_v3 = vshll.u32 %v802_v60, %v228_v54  ;;  %v234_v37 = vadd.s32 127, %v233_v2  ;;  %v401_v24 = vshrl.u32 %v639_v51, %v386_v56 }
  0x5a   :  { %v137_v15 = vxor.u32 2147483648, %v136_v58  ;;  %v331_v23 = vshll.u32 %v848_v13, 30  ;;  %v231_v31 = vshrl.u32 %v213_v59, %v229_v62  ;;  %v390_v26 = vor.u32 %v389_v45, %v388_v11 }
  0x5b   :  { %v393_v27 = vor.u32 %v392_v7, %v391_v21  ;;  %v399_v33 = vor.u32 %v398_v17, %v397_v22  ;;  %v396_v25 = vor.u32 %v395_v10, %v394_v63  ;;  %vm403_vm7 = vcmp.lt.s32.totalorder %v384_v14, 1  ;;  %s526_s1 = spop %525 }
  0x5c   :  { %v332_v39 = vsub.s32 %v328_v57, %v331_v23  ;;  %vm406_vm8 = vcmp.lt.s32.totalorder %v384_v14, 4  ;;  %v138_v41 = vsel %vm55_vm5, %v137_v15, %v136_v58  ;;  %v139_v43 = vsub.s32 4, %v774_v32  ;;  %s44_s20 = smul.f32 %s526_s1, %s665_s0 }
  0x5d   :  { %v387_v60 = vshrl.u32 %v634_v35, %v386_v56  ;;  %v402_v34 = vor.u32 %v401_v24, %v400_v19  ;;  %v235_v36 = vshll.u32 %v234_v37, 23  ;;  %vm405_vm9 = vcmp.lt.s32.totalorder %v384_v14, 3 }
  0x5e   :  { %v334_v18 = vsub.s32 0, %v332_v39  ;;  %v408_v51 = vsel %vm406_vm8, %v396_v25, 2102212464  ;;  %vm404_vm10 = vcmp.lt.s32.totalorder %v384_v14, 2  ;;  %v411_v42 = vsel %vm403_vm7, %v390_v26, %v393_v27 }
  0x5f   :  { %v412_v46 = vsel %vm406_vm8, %v399_v33, 920167782  ;;  %v419_v30 = vshll.u32 %v379_v16, 8  ;;  %v141_v48 = vsel %vm835_vm6, %v675_v4, %v138_v41  ;;  %v232_v29 = vor.u32 %v231_v31, %v230_v3 }
  0x60   :  { %v518_v20 = vmin.u32 %v334_v18, %v332_v39  ;;  %v415_v35 = vsel %vm403_vm7, %v393_v27, %v396_v25  ;;  %v407_v49 = vsel %vm403_vm7, %v387_v60, %v390_v26  ;;  %v409_v50 = vsel %vm405_vm9, %v393_v27, %v408_v51 }
  0x61   :  { %v413_v52 = vsel %vm405_vm9, %v396_v25, %v412_v46  ;;  %v416_v54 = vsel %vm406_vm8, %v402_v34, 1326507024  ;;  %v236_v55 = vor.u32 4788187, %v235_v36  ;;  %556 = vcosq.f32 %v141_v48 }
  0x62   :  { %v336_v56 = vclz %v518_v20  ;;  %v414_v57 = vsel %vm404_vm10, %v411_v42, %v413_v52  ;;  %v417_v58 = vsel %vm405_vm9, %v399_v33, %v416_v54  ;;  %v410_v8 = vsel %vm404_vm10, %v407_v49, %v409_v50 }
  0x63   :  { %v418_v59 = vsel %vm404_vm10, %v415_v35, %v417_v58  ;;  %v875_v61 = vmul.u32.u64.low %v419_v30, %v414_v57  ;;  %v876_v62 = vmul.u32.u64.high %v419_v30, %v414_v57, %v875_v61  ;;  %558 = vsinq.f32 %v141_v48 }
  0x64   :  { %v519_v2 = vadd.s32 4294967294, %v336_v56  ;;  %v880_v11 = vmul.u32.u64.low %v419_v30, %v418_v59  ;;  %v881_v45 = vmul.u32.u64.high %v419_v30, %v418_v59, %v880_v11  ;;  %v140_v21 = vsel %vm55_vm5, %v139_v43, %v774_v32 }
  0x65   :  { %v324_v7 = vadd.s32 %v822_v44, %v819_v38  ;;  %v239_v22 = vcvt.s32.f32 %v232_v29  ;;  %v426_v10 = vmul.u32 %v419_v30, %v410_v8  ;;  %v429_v15 = vadd.s32 1, %v876_v62 }
  0x66   :  { %vm520_vm11 = vcmp.lt.s32.totalorder %v519_v2, 0  ;;  %v237_v16 = vand.u32 2147483647, %v236_v55  ;;  %vm428_vm12 = vc.u32 %v881_v45, %v875_v61  ;;  %v142_v38 = vsel %vm835_vm6, 0, %v140_v21 }
  0x67   :  { %v339_v63 = vsel %vm520_vm11, 0, %v519_v2  ;;  %v430_v32 = vsel %vm428_vm12, %v429_v15, %v876_v62  ;;  %v146_v27 = vadd.s32 3, %v142_v38  ;;  %vm159_vm13 = vcmp.lt.s32.totalorder %v678_v5, 0 }
  0x68   :  { %v340_v14 = vsub.s32 32, %v339_v63  ;;  %v341_v17 = vshll.u32 %v332_v39, %v339_v63  ;;  %v344_v19 = vsub.s32 4294967266, %v339_v63  ;;  %v431_v44 = vadd.s32 %v430_v32, %v426_v10 }
  0x69   :  { %v240_v23 = vmul.f32 %v239_v22, %v237_v16  ;;  %v147_v40 = vand.u32 3, %v146_v27  ;;  %vm270_vm14 = vcmp.lt.s32.totalorder %v683_v6, 0  ;;  %vm901_vm15 = vcmp.le.f32.partialorder %v157_v9, 0.7853982 }
  0x6a   :  { %v342_v3 = vshrl.u32 %v324_v7, %v340_v14  ;;  %v345_v37 = vadd.s32 127, %v344_v19  ;;  %v432_v26 = vadd.s32 536870912, %v431_v44  ;;  %vm909_vm0 = vcmp.le.f32.partialorder %v268_v28, 0.7853982 }
  0x6b   :  { %v241_v43 = vxor.u32 2147483648, %v240_v23  ;;  %vm149_vm1 = vcmp.eq.s32.totalorder %v147_v40, 0  ;;  %vm152_vm2 = vcmp.eq.s32.totalorder %v147_v40, 2  ;;  %v354_v50 = vsub.s32 4, %v848_v13 }
  0x6c   :  { %v343_v24 = vor.u32 %v342_v3, %v341_v17  ;;  %v346_v31 = vshll.u32 %v345_v37, 23  ;;  %v894_v39 = vshrl.u32 %v432_v26, 30  ;;  %vm148_vm3 = vcmp.lt.s32.totalorder %v147_v40, 2 }
  0x6d   :  { %v242_v46 = vsel %vm159_vm13, %v241_v43, %v240_v23  ;;  %v243_v57 = vsub.s32 4, %v793_v47  ;;  %v355_v58 = vsel %vm270_vm14, %v354_v50, %v848_v13  ;;  %vm145_vm4 = vweird.f32 %v675_v4 }
  0x6e   :  { %v347_v33 = vor.u32 4788187, %v346_v31  ;;  %v350_v25 = vcvt.s32.f32 %v343_v24  ;;  %v557_v41 = vpop.eup %556  ;;  %v434_v34 = vshll.u32 %v894_v39, 30  ;;  %v245_v49 = vsel %vm901_vm15, %v678_v5, %v242_v46 }
  0x6f   :  { %v153_v20 = vxor.u32 2147483648, %v557_v41  ;;  %v427_v2 = vadd.s32 %v875_v61, %v881_v45  ;;  %v244_v8 = vsel %vm159_vm13, %v243_v57, %v793_v47  ;;  %v357_v11 = vsel %vm909_vm0, 0, %v355_v58 }
  0x70   :  { %v348_v60 = vand.u32 2147483647, %v347_v33  ;;  %v559_v36 = vpop.eup %558  ;;  %v435_v51 = vsub.s32 %v431_v44, %v434_v34  ;;  %v246_v61 = vsel %vm901_vm15, 0, %v244_v8  ;;  %v361_v45 = vand.u32 3, %v357_v11 }
  0x71   :  { %v150_v29 = vxor.u32 2147483648, %v559_v36  ;;  %v154_v55 = vsel %vm152_vm2, %v153_v20, %v559_v36  ;;  %v263_v15 = vstv %s44_s20  ;;  %v250_v17 = vadd.s32 3, %v246_v61 }
  0x72   :  { %v351_v18 = vmul.f32 %v350_v25, %v348_v60  ;;  %v437_v35 = vsub.s32 0, %v435_v51  ;;  %vm366_vm6 = vcmp.eq.s32.totalorder %v361_v45, 2  ;;  %vm363_vm7 = vcmp.eq.s32.totalorder %v361_v45, 0 }
  0x73   :  { %v151_v54 = vsel %vm149_vm1, %v557_v41, %v150_v29  ;;  %vm362_vm8 = vcmp.lt.s32.totalorder %v361_v45, 2  ;;  %v251_v27 = vand.u32 3, %v250_v17  ;;  %vm360_vm9 = vweird.f32 %v683_v6 }
  0x74   :  { %v352_v48 = vxor.u32 2147483648, %v351_v18  ;;  %v522_v52 = vmin.u32 %v437_v35, %v435_v51  ;;  %v155_v62 = vsel %vm148_vm3, %v151_v54, %v154_v55  ;;  %v474_v60 = vstv %s936_s21 }
  0x75   :  { %v156_v13 = vsel %vm145_vm4, nan, %v155_v62  ;;  %v481_v34 = vstv %s938_s22  ;;  %vm373_vm10 = vcmp.lt.s32.totalorder %v772_v12, 0  ;;  %vm949_vm11 = vcmp.le.f32.partialorder %v371_v53, 0.7853982 }
  0x76   :  { %v353_v9 = vsel %vm270_vm14, %v352_v48, %v351_v18  ;;  %v439_v56 = vclz %v522_v52  ;;  %v261_v47 = vmul.f32 %v156_v13, %v156_v13  ;;  %vm253_vm12 = vcmp.eq.s32.totalorder %v251_v27, 0 }
  0x77   :  { %v356_v28 = vsel %vm909_vm0, %v683_v6, %v353_v9  ;;  %vm256_vm13 = vcmp.eq.s32.totalorder %v251_v27, 2  ;;  %v457_v29 = vsub.s32 4, %v894_v39  ;;  %vm252_vm14 = vcmp.lt.s32.totalorder %v251_v27, 2 }
  0x78   :  { %560 = vcosq.f32 %v356_v28  ;;  %v523_v59 = vadd.s32 4294967294, %v439_v56  ;;  %v264_v38 = vmul.f32 %v263_v15, %v261_v47  ;;  %vm249_vm15 = vweird.f32 %v678_v5 }
  0x79   :  { %562 = vsinq.f32 %v356_v28  ;;  %v458_v50 = vsel %vm373_vm10, %v457_v29, %v894_v39  ;;  %vm463_vm3 = vweird.f32 %v772_v12 }
  0x7a   :  { %564 = vcosq.f32 %v245_v49  ;;  %vm524_vm5 = vcmp.lt.s32.totalorder %v523_v59, 0  ;;  %v266_v36 = vadd.f32 %v264_v38, %v667_v0  ;;  %v460_v52 = vsel %vm949_vm11, 0, %v458_v50 }
  0x7b   :  { %566 = vsinq.f32 %v245_v49  ;;  %v442_v21 = vsel %vm524_vm5, 0, %v523_v59  ;;  %v464_v55 = vand.u32 3, %v460_v52 }
  0x7c   :  { %568 = vtanh.f32 %v683_v6  ;;  %v443_v7 = vsub.s32 32, %v442_v21  ;;  %v444_v22 = vshll.u32 %v435_v51, %v442_v21  ;;  %v447_v4 = vsub.s32 4294967266, %v442_v21 }
  0x7d   :  { %vm469_vm0 = vcmp.eq.s32.totalorder %v464_v55, 2  ;;  %vm466_vm1 = vcmp.eq.s32.totalorder %v464_v55, 0  ;;  %vm465_vm2 = vcmp.lt.s32.totalorder %v464_v55, 2 }
  0x7e   :  { %v445_v63 = vshrl.u32 %v427_v2, %v443_v7  ;;  %v448_v10 = vadd.s32 127, %v447_v4 }
  0x80   :  { %v446_v16 = vor.u32 %v445_v63, %v444_v22  ;;  %v449_v14 = vshll.u32 %v448_v10, 23 }
  0x82   :  { %v450_v3 = vor.u32 4788187, %v449_v14  ;;  %v453_v37 = vcvt.s32.f32 %v446_v16 }
  0x84   :  { %v451_v31 = vand.u32 2147483647, %v450_v3 }
  0x85   :  { %v561_v19 = vpop.eup %560 }
  0x86   :  { %v563_v32 = vpop.eup %562  ;;  %v367_v44 = vxor.u32 2147483648, %v561_v19  ;;  %v454_v43 = vmul.f32 %v453_v37, %v451_v31 }
  0x87   :  { %v565_v23 = vpop.eup %564  ;;  %v364_v24 = vxor.u32 2147483648, %v563_v32 }
  0x88   :  { %v567_v26 = vpop.eup %566  ;;  %v368_v33 = vsel %vm366_vm6, %v367_v44, %v563_v32  ;;  %v455_v42 = vxor.u32 2147483648, %v454_v43  ;;  %v257_v46 = vxor.u32 2147483648, %v565_v23 }
  0x89   :  { %v569_v25 = vpop.eup %568  ;;  %v365_v41 = vsel %vm363_vm7, %v561_v19, %v364_v24  ;;  %v254_v6 = vxor.u32 2147483648, %v567_v26 }
  0x8a   :  { %v369_v40 = vsel %vm362_vm8, %v365_v41, %v368_v33  ;;  %v482_v48 = vmul.f32 %v569_v25, %v481_v34  ;;  %v456_v0 = vsel %vm373_vm10, %v455_v42, %v454_v43  ;;  %v258_v9 = vsel %vm256_vm13, %v257_v46, %v567_v26 }
  0x8b   :  { %v370_v18 = vsel %vm360_vm9, nan, %v369_v40  ;;  %v459_v20 = vsel %vm949_vm11, %v772_v12, %v456_v0  ;;  %v255_v35 = vsel %vm253_vm12, %v565_v23, %v254_v6 }
  0x8c   :  { %v475_v30 = vmul.f32 %v474_v60, %v370_v18  ;;  %570 = vcosq.f32 %v459_v20  ;;  %v259_v28 = vsel %vm252_vm14, %v255_v35, %v258_v9 }
  0x8d   :  { %572 = vsinq.f32 %v459_v20  ;;  %v260_v54 = vsel %vm249_vm15, nan, %v259_v28 }
  0x8e   :  { %v477_v53 = vadd.f32 %v475_v30, %v266_v36  ;;  %574 = vtanh.f32 %v772_v12  ;;  %v262_v56 = vmul.f32 %v260_v54, %v260_v54 }
  0x90   :  { %v484_v49 = vadd.f32 %v482_v48, %v477_v53  ;;  %v265_v59 = vmul.f32 %v263_v15, %v262_v56 }
  0x92   :  { %486 = vst [vmem:[#allocation7] sm:$0xff] %v484_v49  ;;  %v267_v11 = vadd.f32 %v265_v59, %v669_v1 }
  0x99   :  { %v571_v57 = vpop.eup %570 }
  0x9a   :  { %v573_v58 = vpop.eup %572  ;;  %v470_v62 = vxor.u32 2147483648, %v571_v57 }
  0x9b   :  { %v467_v39 = vxor.u32 2147483648, %v573_v58  ;;  %v575_v2 = vpop.eup %574 }
  0x9c   :  { %v471_v5 = vsel %vm469_vm0, %v470_v62, %v573_v58  ;;  %v483_v22 = vmul.f32 %v575_v2, %v481_v34 }
  0x9d   :  { %v468_v8 = vsel %vm466_vm1, %v571_v57, %v467_v39 }
  0x9e   :  { %v472_v21 = vsel %vm465_vm2, %v468_v8, %v471_v5 }
  0x9f   :  { %v473_v13 = vsel %vm463_vm3, nan, %v472_v21 }
  0xa0   :  { %v476_v7 = vmul.f32 %v474_v60, %v473_v13 }
  0xa2   :  { %v478_v4 = vadd.f32 %v476_v7, %v267_v11 }
  0xa4   :  { %v485_v61 = vadd.f32 %v483_v22, %v478_v4 }
  0xa6   :  { %487 = vst [vmem:[#allocation7 + $0x8] sm:$0xff] %v485_v61 }
  0xa7   :  { %615 = shalt.err (!%p612_p9)
}
  0xa8   :  { %499 = dma.vmem_to_hbm [thread:$0]  %s494_s24, 256, %s976_s2, [#allocation4], %s632_s15, %s632_s15, %s633_s16  }
  0xa9   :  { %628 = dma.done.wait [#allocation4], 256  }
  0xaa   :  { %629 = vsyncadd [#allocation4], 4294967040 }
  0xab   :  { %503 = vsyncpa [#allocation3], 1 }
  0xac   :  { %504 = vsyncpa [#allocation4], 1 }
  0xad   :  { %505 = vsyncpa [#allocation5], 1 }

</bundles_post_ra>
